<compile_context>
chip_gen: v5e
topology: v5e:2x2
jax: 0.10.0
libtpu: 0.0.40
codegen_flags: <defaults>
</compile_context>

<pallas_src>
import functools

import jax
import jax.numpy as jnp
from jax.experimental import pallas as pl
from jax.experimental.pallas import tpu as pltpu


def _round_up(x, m):
    return ((x + m - 1) // m) * m


# ----------------------------------------------------------------------------
# Kernel
# ----------------------------------------------------------------------------

def _mod_encode_kernel_flat(x_ref, o_ref, *, num_mods, embed_dim):
    """x_ref: (tb, num_mods * embed_dim) VMEM tile, o_ref: (tb, embed_dim).

    embed_dim is a multiple of 128, so every modality slab is a lane-aligned
    slice; the sum is a statically unrolled chain of VPU adds accumulating in
    a single (tb, embed_dim) f32 accumulator.
    """
    acc = x_ref[:, 0:embed_dim].astype(jnp.float32)
    for m in range(1, num_mods):
        acc = acc + x_ref[:, m * embed_dim:(m + 1) * embed_dim].astype(jnp.float32)
    o_ref[...] = acc.astype(o_ref.dtype)


# ----------------------------------------------------------------------------
# Tile / VMEM policy (generation aware)
# ----------------------------------------------------------------------------

def _vmem_limits():
    """Return (vmem_limit_bytes, tile_budget_bytes)."""
    try:
        phys = int(pltpu.get_tpu_info().vmem_capacity_bytes)
    except Exception:  # pragma: no cover - conservative fallback off-TPU
        phys = 64 << 20
    if phys >= (128 << 20):
        # v5e / v6e: 128 MiB physical.  One input + one output block, no
        # scratch -> a 64 MiB scoped limit is safe and allows large tiles.
        vmem_limit = 64 << 20
    else:
        # v7x (64 MiB per TensorCore) or unknown smaller part: ~3/4 of
        # physical, leaving headroom for Mosaic internal scratch.
        vmem_limit = max(min((phys * 3) // 4, 48 << 20), 16 << 20)
    # Working-set budget: the fits() check already accounts for double
    # buffering explicitly, so only keep a modest safety margin here.
    tile_budget = int(0.8 * vmem_limit)
    return vmem_limit, tile_budget


def _pick_batch_tile(B, M, Dp, in_itemsize, out_itemsize, tile_budget,
                     target_rows=1024, min_steps=4):
    """Pick a multiple-of-8 batch tile from the VMEM budget (cdiv grid, so tb
    does NOT need to divide B).  Enforces a multi-step grid whenever B > 8 so
    the pipeline always overlaps DMA with compute and v7x megacore can shard
    the batch axis across its two TensorCores."""
    if B <= 8:
        return B

    def footprint(tb):
        # Double-buffered input + output blocks, plus the f32 accumulator and
        # one f32 upcast temporary created by the unrolled add chain.
        return (2 * tb * (M * Dp * in_itemsize + Dp * out_itemsize)
                + 2 * tb * Dp * 4)

    cap = min(target_rows, _round_up(B, 8))
    # Force >= min_steps grid steps (and >= 2 for any B > 8).
    cap = min(cap, max(8, _round_up(pl.cdiv(B, min_steps), 8)))
    tb = cap - (cap % 8)
    while tb > 8 and footprint(tb) > tile_budget:
        tb -= 8
    return max(tb, 8)


# ----------------------------------------------------------------------------
# Wrapper
# ----------------------------------------------------------------------------

def mod_encode_forward(x_mod, *, batch_tile=None):
    """Pallas implementation of ModEncode.forward.

    x_mod: (batch, num_mods, embed_dim)  ->  (batch, embed_dim)
    (equivalent to torch's permute(1, 0, 2).sum(dim=0))
    """
    B, M, D = x_mod.shape
    out_dtype = x_mod.dtype
    in_itemsize = jnp.dtype(x_mod.dtype).itemsize
    out_itemsize = jnp.dtype(out_dtype).itemsize

    # Pad embed_dim to a lane multiple so modality slabs stay lane-aligned and
    # the output stores stay lane-dense / unmasked.
    Dp = _round_up(D, 128)
    if Dp != D:
        x_mod = jnp.pad(x_mod, ((0, 0), (0, 0), (0, Dp - D)))
    x_flat = x_mod.reshape(B, M * Dp)   # contiguous reshape: free

    vmem_limit, tile_budget = _vmem_limits()

    if batch_tile is None:
        tb = _pick_batch_tile(B, M, Dp, in_itemsize, out_itemsize, tile_budget)
    else:
        tb = min(int(batch_tile), B)
        assert tb == B or tb % 8 == 0, (
            f"batch_tile={tb} must be a multiple of 8 (or >= batch={B}) to "
            f"satisfy the (8,128) block layout constraint")

    grid = (pl.cdiv(B, tb),)   # last block may be partial; row-wise op -> OK

    compiler_params = pltpu.CompilerParams(
        dimension_semantics=("parallel",),
        vmem_limit_bytes=int(vmem_limit),
    )
    cost = pl.CostEstimate(
        flops=int(B * max(M - 1, 0) * D),
        transcendentals=0,
        bytes_accessed=int(B * M * Dp * in_itemsize + B * Dp * out_itemsize),
    )

    kernel = functools.partial(_mod_encode_kernel_flat,
                               num_mods=M, embed_dim=Dp)
    out = pl.pallas_call(
        kernel,
        out_shape=jax.ShapeDtypeStruct((B, Dp), out_dtype),
        grid_spec=pltpu.PrefetchScalarGridSpec(
            num_scalar_prefetch=0,
            grid=grid,
            in_specs=[pl.BlockSpec((tb, M * Dp), lambda i: (i, 0))],
            out_specs=pl.BlockSpec((tb, Dp), lambda i: (i, 0)),
        ),
        compiler_params=compiler_params,
        cost_estimate=cost,
    )(x_flat)

    if Dp != D:
        out = out[:, :D]
    return out


# ----------------------------------------------------------------------------
# Unused-by-forward parameters (structural fidelity with ModEncode.__init__)
# ----------------------------------------------------------------------------

def init_mod_encode_params(key, sizes, embed_dim, bias=True):
    """Deterministic parameter init matching ModEncode.__init__ shapes.

    Note: these parameters (proj Linear weights/biases) are never used by
    forward(); they exist only for structural fidelity with the module.
    """
    params = []
    for i, _ in enumerate(sizes):
        k_w, k_b = jax.random.split(jax.random.fold_in(key, i))
        w = jax.random.normal(k_w, (embed_dim, embed_dim), jnp.float32) * 0.02
        b = (jax.random.normal(k_b, (embed_dim,), jnp.float32) * 0.02
             if bias else None)
        params.append({"weight": w, "bias": b})
    return params


if __name__ == "__main__":
    key = jax.random.PRNGKey(0)
    k1, k2, kp = jax.random.split(key, 3)

    # ---- 1) Lane-aligned fast path, auto-picked tile (multi-step cdiv grid).
    B, M, D = 32, 4, 256
    sizes = [16] * M  # one entry per modality (only len() matters here)
    x_mod = jax.random.normal(k1, (B, M, D), jnp.float32)
    _params = init_mod_encode_params(kp, sizes, D, bias=True)  # unused by forward

    ref = jnp.sum(jnp.transpose(x_mod, (1, 0, 2)), axis=0)
    out = jax.block_until_ready(mod_encode_forward(x_mod))
    assert out.shape == (B, D)
    assert jnp.allclose(out, ref, atol=1e-5, rtol=1e-5)

    # ---- 2) Explicit batch tile (2 parallel grid steps).
    out_tiled = jax.block_until_ready(mod_encode_forward(x_mod, batch_tile=16))
    assert jnp.allclose(out_tiled, ref, atol=1e-5, rtol=1e-5)

    # ---- 3) Ragged batch (partial last block via cdiv grid) + non-128 embed
    #         dim (lane-padded path) + bf16 input.
    B2, M2, D2 = 28, 3, 192
    x2 = jax.random.normal(k2, (B2, M2, D2), jnp.bfloat16)
    ref2 = jnp.sum(jnp.transpose(x2, (1, 0, 2)).astype(jnp.float32),
                   axis=0).astype(jnp.bfloat16)
    out2 = jax.block_until_ready(mod_encode_forward(x2))
    assert out2.shape == (B2, D2)
    assert jnp.allclose(out2.astype(jnp.float32), ref2.astype(jnp.float32),
                        atol=5e-2, rtol=5e-2)

    print("KERNEL_OK")
</pallas_src>

<mosaic_0001>
module attributes {stable_mosaic.version = 11 : i64} {
  func.func @_mod_encode_kernel_flat(%arg0: i32, %arg1: memref<8x1024xf32, #tpu.memory_space<vmem>>, %arg2: memref<8x256xf32, #tpu.memory_space<vmem>>) attributes {dimension_semantics = [#tpu.dimension_semantics<parallel>], iteration_bounds = array<i64: 4>, scalar_prefetch = 0 : i64, scratch_operands = 0 : i64, tpu.core_type = #tpu.core_type<tc>, window_params = [{transform_indices = @transform_0, window_bounds = array<i64: 8, 1024>}, {transform_indices = @transform_1, window_bounds = array<i64: 8, 256>}]} {
    %c0 = arith.constant 0 : index
    %c0_0 = arith.constant 0 : index
    %0 = vector.load %arg1[%c0, %c0_0] : memref<8x1024xf32, #tpu.memory_space<vmem>>, vector<8x256xf32>
    %c0_1 = arith.constant 0 : index
    %c256 = arith.constant 256 : index
    %1 = vector.load %arg1[%c0_1, %c256] : memref<8x1024xf32, #tpu.memory_space<vmem>>, vector<8x256xf32>
    %2 = arith.addf %0, %1 : vector<8x256xf32>
    %c0_2 = arith.constant 0 : index
    %c512 = arith.constant 512 : index
    %3 = vector.load %arg1[%c0_2, %c512] : memref<8x1024xf32, #tpu.memory_space<vmem>>, vector<8x256xf32>
    %4 = arith.addf %2, %3 : vector<8x256xf32>
    %c0_3 = arith.constant 0 : index
    %c768 = arith.constant 768 : index
    %5 = vector.load %arg1[%c0_3, %c768] : memref<8x1024xf32, #tpu.memory_space<vmem>>, vector<8x256xf32>
    %6 = arith.addf %4, %5 : vector<8x256xf32>
    %c0_4 = arith.constant 0 : index
    %c0_5 = arith.constant 0 : index
    %7 = vector.load %arg2[%c0_4, %c0_5] : memref<8x256xf32, #tpu.memory_space<vmem>>, vector<8x256xf32>
    tpu.vector_store %arg2[%c0_4, %c0_5], %6 {strides = array<i32>} : memref<8x256xf32, #tpu.memory_space<vmem>>, vector<8x256xf32>,
    return
  }
  func.func @transform_0(%arg0: i32) -> (i32, i32) {
    %c0_i32 = arith.constant 0 : i32
    %c0_i32_0 = arith.constant 0 : i32
    return %arg0, %c0_i32 : i32, i32
  }
  func.func @transform_1(%arg0: i32) -> (i32, i32) {
    %c0_i32 = arith.constant 0 : i32
    %c0_i32_0 = arith.constant 0 : i32
    return %arg0, %c0_i32 : i32, i32
  }
}

</mosaic_0001>

<bundles_post_ra>
// kernel: tpu_custom_call.1
= control target key start
LH: loop header
LB: loop body
LE: loop exit
PB: predicated region body
PF: predicated region fallthrough
CT: control target
= control target key end

     0   :  { %6 = vsyncpa [#allocation3], 0  ;;  %s534_s0 = inlined_call_operand.hbm [shape: f32[32,1024], index: 0, kind: input, shape index: {}]   ;;  %s535_s1 = inlined_call_operand.hbm [shape: f32[32,256], index: 1, kind: output, shape index: {}]  }
   0x1   :  { %8 = vsyncpa [#allocation3 + $0x1], 0 }
   0x2   :  { %9 = vsyncpa [#allocation4], 0 }
   0x3   :  { %11 = vsyncpa [#allocation4 + $0x1], 0  ;;  %s408_s6 = smov 0   ;;  %s410_s7 = smov 0  }
   0x4   :  { %s412_s8 = smov 0   ;;  %s414_s9 = smov 0  }
   0x5 LB: > { %s429_s10 = sadd.s32 4294967295, %s396_s9   ;;  %s238_s11 = sadd.s32 4294967294, %s396_s9   ;;  %s396_s9 = sphi %s414_s9, %s544_s9   ;;  %s392_s8 = sphi %s412_s8, %s543_s8   ;;  %s388_s7 = sphi %s410_s7, %s542_s7   ;;  %s384_s6 = sphi %s408_s6, %s541_s6  }
   0x6   : > { %s433_s12 = sadd.s32 1, %s396_s9   ;;  %s24_s13 = sadd.s32 1, %s392_s8 }
   0x7   : > { %s21_s14 = ssub.s32 %s396_s9, %s433_s12  ;;  %p31_p0 = scmp.ne.s32.totalorder %s392_s8, %s388_s7 }
   0x8   : > { %p22_p1 = scmp.eq.s32.totalorder %s21_s14, 0  ;;  %p32_p2 = scmp.eq.s32.totalorder %s396_s9, 0 }
   0x9   : > { %p37_p3 = scmp.ne.s32.totalorder %s388_s7, %s384_s6  ;;  %p38_p4 = scmp.eq.s32.totalorder %s429_s10, 0 }
   0xa   : > { %s445_s15 = scalar_select %p22_p1, %s392_s8, %s24_s13  }
   0xb   : > { %p447_p5 = por %p32_p2, %p31_p0  ;;  %p451_p6 = por %p38_p4, %p37_p3 }
   0xc   : > { %p61_p7 = scmp.eq.s32.totalorder %s429_s10, 3  ;;  %p67_p8 = scmp.eq.s32.totalorder %s238_s11, 3 }
   0xd   : > { %p266_p9 = scmp.lt.s32.totalorder %s396_s9, 4  ;;  %s87_s20 = sand.u32 1, %s392_s8  }
   0xe   : > { %p457_p10 = por %p61_p7, %p31_p0  ;;  %p461_p11 = por %p67_p8, %p37_p3 }
   0xf   : > { %s252_s21 = sshll.u32 %s396_s9, 6  ;;  %s241_s22 = sshll.u32 %s87_s20, 6 }
  0x10   : > { %s96_s25 = scalar_lea.hbm %s534_s0, %s252_s21  ;;  %s91_s27 = scalar_lea.vmem [#allocation2], %s241_s22 }
  0x11   : > { %s98_s26 = sshll.u32 %s96_s25, 4  ;;  %s100_s28 = sshll.u32 %s91_s27, 4  ;;  %s99_s26 = int_to_ptr.hbm [resolvable:$true] %s98_s26  ;;  %s101_s28 = int_to_ptr.vmem [resolvable:$true] %s100_s28 }
  0x12   : > { %p472_p12 = pnand %p266_p9, %p447_p5  ;;  %p244_p13 = scmp.ge.s32.totalorder %s396_s9, 1 }
  0x13   : > { %p105_p0 = scmp.lt.s32.totalorder %s396_s9, 5  ;;  %s88_s30 = scalar_lea.sflag [#allocation3], %s87_s20 }
  0x14   : > { %s300_s2 = sshra.s32 %s99_s26, 4  ;;  %p304_p2 = pneg %p472_p12  ;;  %s301_s2 = int_to_ptr.hbm [resolvable:$true] %s300_s2 }
  0x15   : > { %s302_s3 = scalar_lea.hbm %s301_s2, 64  ;;  %s307_s11 = scalar_lea.hbm %s534_s0, 256 }
  0x16   : > { %p303_p1 = scmp.ne.s32.totalorder %s301_s2, %s302_s3  ;;  %p308_p5 = scmp.lt.s32.totalorder %s301_s2, %s534_s0 }
  0x17   : > { %p309_p7 = scmp.lt.s32.totalorder %s307_s11, %s302_s3 }
  0x18   : > { %p305_p3 = pnand %p304_p2, %p303_p1 }
  0x19   : > { %p310_p8 = por %p309_p7, %p308_p5 }
  0x1a   : > { %p306_p4 = pneg %p305_p3 }
  0x1c   : > { %p311_p9 = pnand %p310_p8, %p306_p4 }
  0x1e   : > { %314 = shalt.err (!%p311_p9)
}
  0x1f   : > { %261 = dma.hbm_to_vmem [thread:$0]  (!%p472_p12), %s99_s26, 1024, %s101_s28, %s88_s30  }
  0x20   : > { %p106_p1 = pnand %p244_p13, %p105_p0 }
  0x21   : > { %s493_s16 = sand.u32 (!%p106_p1), 1, %s388_s7  }
  0x22   : > { %109 = sbr.rel (%p106_p1) target bundleno = 55 (0x37), region = 24  ;;  %s245_s20 = sshll.u32 (!%p106_p1), %s493_s16, 6 }
  0x23   : > { %s112_s21 = scalar_lea.sflag (!%p106_p1), [#allocation3], %s493_s16  ;;  %s115_s22 = scalar_lea.vmem (!%p106_p1), [#allocation2], %s245_s20 }
  0x27   : > { %375 = dma.done.wait (%p451_p6), %s112_s21, 1024  }
  0x28   : > { %377 = vsyncadd (%p451_p6), %s112_s21, 4294966272  ;;  %s246_s23 = sshll.u32 %s493_s16, 4  ;;  %s253_s24 = sshll.u32 %s429_s10, 4  ;;  %v135_v0 = vld [vmem:[%s115_s22] sm:$0xff]  ;;  %v137_v1 = vld [vmem:[%s115_s22 + $0x10] sm:$0xff] }
  0x29   : > { %v141_v2 = vld [vmem:[%s115_s22 + $0x20] sm:$0xff]  ;;  %s163_s27 = scalar_lea.hbm %s535_s1, %s253_s24  ;;  %v139_v3 = vadd.f32 %v137_v1, %v135_v0  ;;  %v136_v4 = vld [vmem:[%s115_s22 + $0x8] sm:$0xff]  ;;  %v138_v5 = vld [vmem:[%s115_s22 + $0x18] sm:$0xff]  ;;  %s134_s17 = scalar_lea.vmem [#allocation5], %s246_s23 }
  0x2a   : > { %v145_v6 = vld [vmem:[%s115_s22 + $0x30] sm:$0xff]  ;;  %v140_v7 = vadd.f32 %v138_v5, %v136_v4  ;;  %v142_v8 = vld [vmem:[%s115_s22 + $0x28] sm:$0xff]  ;;  %s165_s28 = sshll.u32 %s134_s17, 4  ;;  %v146_v10 = vld [vmem:[%s115_s22 + $0x38] sm:$0xff]  ;;  %s167_s10 = sshll.u32 %s163_s27, 4  ;;  %s166_s28 = int_to_ptr.vmem [resolvable:$true] %s165_s28  ;;  %s168_s10 = int_to_ptr.hbm [resolvable:$true] %s167_s10 }
  0x2b   : > { %v143_v9 = vadd.f32 %v141_v2, %v139_v3  ;;  %s152_s29 = scalar_lea.sflag [#allocation4], %s493_s16  ;;  %s344_s30 = sshra.s32 %s168_s10, 4  ;;  %s345_s30 = int_to_ptr.hbm [resolvable:$true] %s344_s30 }
  0x2c   : > { %v144_v11 = vadd.f32 %v142_v8, %v140_v7  ;;  %s346_s2 = scalar_lea.hbm %s345_s30, 16  ;;  %s350_s5 = scalar_lea.hbm %s535_s1, 64 }
  0x2d   : > { %v147_v12 = vadd.f32 %v145_v6, %v143_v9  ;;  %p347_p6 = scmp.ne.s32.totalorder %s345_s30, %s346_s2  ;;  %p351_p0 = scmp.lt.s32.totalorder %s345_s30, %s535_s1 }
  0x2e   : > { %v148_v13 = vadd.f32 %v146_v10, %v144_v11  ;;  %p352_p2 = scmp.lt.s32.totalorder %s350_s5, %s346_s2 }
  0x2f   : > { %149 = vst [vmem:[%s134_s17] sm:$0xff] %v147_v12  ;;  %p348_p12 = pnand %p347_p6, %p457_p10 }
  0x30   : > { %150 = vst [vmem:[%s134_s17 + $0x8] sm:$0xff] %v148_v13  ;;  %p353_p3 = por %p352_p2, %p351_p0 }
  0x31   : > { %p349_p13 = pneg %p348_p12 }
  0x33   : > { %p354_p4 = pnand %p353_p3, %p349_p13 }
  0x35   : > { %357 = shalt.err (!%p354_p4)
}
  0x36   : > { %256 = dma.vmem_to_hbm [thread:$0]  (%p457_p10), %s166_s28, 256, %s168_s10, %s152_s29  }
  0x37 PF: > { %p267_p5 = scmp.ge.s32.totalorder %s396_s9, 2  ;;  %s179_s14 = sand.u32 1, %s384_s6  }
  0x38   : > { %s180_s16 = scalar_lea.sflag [#allocation4], %s179_s14 }
  0x39   : > { %p263_p7 = pnand %p267_p5, %p461_p11 }
  0x3b   : > { %p264_p8 = pneg %p263_p7 }
  0x3d   : > { %379 = dma.done.wait (%p264_p8), %s180_s16, 256  }
  0x3e   : > { %381 = vsyncadd (%p264_p8), %s180_s16, 4294967040  ;;  %p14_p9 = scmp.ge.s32.totalorder %s433_s12, 6   ;;  %s541_s6 = smov %s388_s7 }
  0x3f   : > { %s542_s7 = smov %s392_s8  ;;  %s543_s8 = smov %s445_s15 }
  0x40   : > { %s544_s9 = smov %s433_s12  ;;  %16 = sbr.rel (!%p14_p9) target bundleno = 5 (0x5), region = 69 }
  0x45   :  { %186 = vsyncpa [#allocation3], 1 }
  0x46   :  { %188 = vsyncpa [#allocation3 + $0x1], 1 }
  0x47   :  { %189 = vsyncpa [#allocation4], 1 }
  0x48   :  { %191 = vsyncpa [#allocation4 + $0x1], 1 }

</bundles_post_ra>
